<compile_context>
chip_gen: v6e
topology: v6e:2x2x1
jax: 0.10.0
libtpu: 0.0.40
codegen_flags: <defaults>
</compile_context>

<pallas_src>
import functools

import jax
import jax.numpy as jnp
from jax import lax
from jax.experimental import pallas as pl
from jax.experimental.pallas import tpu as pltpu

# DeiT preprocessing constants (facebook/deit-base-distilled-patch16-224)
_RESIZE = 256
_CROP = 224
_IMAGE_MEAN = (0.485, 0.456, 0.406)
_IMAGE_STD = (0.229, 0.224, 0.225)
_RESCALE = 1.0 / 255.0
# ((x / 255) - mean) / std  ==  x * scale + bias   (per channel)
_SCALE_C = tuple(_RESCALE / s for s in _IMAGE_STD)
_BIAS_C = tuple(-m / s for m, s in zip(_IMAGE_MEAN, _IMAGE_STD))

# Lane blocks are multiples of lcm(128, 3): lane-dense (>=128) and aligned to
# the RGB interleave of the NHWC slab.
_LANE_QUANT = 384


def _round_up(x, m):
    return (x + m - 1) // m * m


def _tpu_limits():
    """Chip-aware VMEM capacity / TensorCore count (conservative fallbacks)."""
    cap = None
    cores = None
    try:
        info = pltpu.get_tpu_info()
        cap = getattr(info, "vmem_capacity_bytes", None)
        for name in ("num_cores", "core_count", "num_tensorcores"):
            v = getattr(info, name, None)
            if isinstance(v, int) and v > 0:
                cores = v
                break
    except Exception:
        pass
    if not cap:
        cap = 64 << 20   # v7x has the smallest physical VMEM -> safe everywhere
    if not cores:
        cores = 2        # assume multi-TC (v7x); an extra grid step costs ~0.35us on 1-TC chips
    return cap, cores


def _choose_lane_block(batch, h, lanes, budget_bytes, num_cores):
    """Pick the lane-block width for the (B, H, W*3) slab."""
    if lanes <= _LANE_QUANT:
        return lanes                                   # single full-width block
    # Per-step footprint (double buffered): u8 input h*wt, f32 output 224*wt,
    # resident f32 weight matrix 224*h.
    avail = budget_bytes // 2 - 4 * _CROP * h
    per_lane = h + 4 * _CROP
    wt = (max(avail, 0) // per_lane) // _LANE_QUANT * _LANE_QUANT
    wt = max(_LANE_QUANT, min(wt, (lanes // _LANE_QUANT) * _LANE_QUANT, 6144))
    # Guarantee >=2 grid steps when possible so both v7x TensorCores get work.
    if num_cores >= 2 and batch * ((lanes + wt - 1) // wt) < 2:
        wt = max(_LANE_QUANT, ((lanes // 2) // _LANE_QUANT) * _LANE_QUANT)
    return wt


def _norm_vresize_kernel(wv_ref, x_ref, o_ref):
    """Fused u8->f32 cast + vertical bicubic resize/crop (MXU) + normalize."""
    wt = x_ref.shape[-1]
    # NHWC slab: lane index = 3*w + c.  Every lane-block start is a multiple of
    # 3 (block width is a multiple of 384, or the full row), so the channel
    # pattern is block-invariant and scale/bias fold to constant vregs.
    ch = lax.broadcasted_iota(jnp.int32, (1, wt), 1) % 3
    scale = jnp.where(ch == 0, _SCALE_C[0],
                      jnp.where(ch == 1, _SCALE_C[1], _SCALE_C[2])
                      ).astype(jnp.float32)
    bias = jnp.where(ch == 0, _BIAS_C[0],
                     jnp.where(ch == 1, _BIAS_C[1], _BIAS_C[2])
                     ).astype(jnp.float32)
    x = x_ref[0].astype(jnp.float32)                         # (H, wt) u8 -> f32
    # Vertical bicubic resize + center crop as one MXU matmul: (224, H) @ (H, wt).
    y = jnp.dot(wv_ref[...], x, preferred_element_type=jnp.float32)
    # Per-channel affine after the matmul (scale/bias are constant along the
    # contracted H axis, so this is exact and touches only 224 rows).
    o_ref[0] = y * scale + bias


def _pallas_norm_vresize(x_u8, wv):
    """(B, H, W*3) uint8 slab -> (B, 224, W*3) f32, normalized + row-resized/cropped."""
    b, h, lanes = x_u8.shape
    cap, cores = _tpu_limits()
    budget = min(cap // 4, 32 << 20)
    wt = _choose_lane_block(b, h, lanes, budget, cores)
    grid = (b, (lanes + wt - 1) // wt)       # cdiv: ragged tail block is masked

    # Explicit, generation-aware scoped-VMEM limit (padded to layout tiles).
    wt_p = _round_up(wt, 128)
    footprint = 2 * (_round_up(h, 32) * wt_p            # u8 input (double buffered)
                     + 4 * _CROP * wt_p                  # f32 output
                     + 4 * _CROP * _round_up(h, 128))    # f32 weights
    vmem_limit = int(min(max(2 * footprint + (8 << 20), 24 << 20), cap * 3 // 4))

    return pl.pallas_call(
        _norm_vresize_kernel,
        out_shape=jax.ShapeDtypeStruct((b, _CROP, lanes), jnp.float32),
        grid_spec=pltpu.PrefetchScalarGridSpec(
            num_scalar_prefetch=0,
            grid=grid,
            in_specs=[
                pl.BlockSpec((_CROP, h), lambda i, j: (0, 0)),     # Wv (resident)
                pl.BlockSpec((1, h, wt), lambda i, j: (i, 0, j)),  # raw u8 NHWC slab
            ],
            out_specs=pl.BlockSpec((1, _CROP, wt), lambda i, j: (i, 0, j)),
        ),
        compiler_params=pltpu.CompilerParams(
            dimension_semantics=("parallel", "parallel"),
            vmem_limit_bytes=vmem_limit,
        ),
    )(wv, x_u8)


@functools.lru_cache(maxsize=None)
def _crop_resize_weights(in_size):
    """(224, in_size) matrix == 'bicubic resize in_size->256 then center-crop 224'.

    Extracted from jax.image.resize itself (resize of the identity), so the
    weights match the reference resize exactly; the crop is folded in by
    slicing rows, so only the 224 kept outputs are ever computed.
    """
    eye = jnp.eye(in_size, dtype=jnp.float32)
    w_full = jax.image.resize(eye, (_RESIZE, in_size), method="bicubic")
    off = (_RESIZE - _CROP) // 2
    return w_full[off:off + _CROP]


@jax.jit
def _encode_pixels(img_u8, wv, wh):
    b, h, w, c = img_u8.shape
    # Contiguous reshape only (no NHWC->NCHW transpose feeding the kernel).
    slab = img_u8.reshape(b, h, w * c)
    z = _pallas_norm_vresize(slab, wv)           # (B, 224, W*3)
    z = z.reshape(b, _CROP, w, c)
    # Horizontal bicubic resize + crop as one contraction, with the final
    # NHWC -> NCHW transpose folded into the einsum output order.
    return jnp.einsum("bhwc,ow->bcho", z, wh,
                      precision=jax.lax.Precision.HIGHEST)


def deit_image_encode(image_u8):
    """DeiT-style preprocessing: (B, H, W, 3) uint8 -> (B, 3, 224, 224) f32 NCHW."""
    if image_u8.ndim == 3:
        image_u8 = image_u8[None]
    b, h, w, c = image_u8.shape
    assert c == 3, "expected RGB images (B, H, W, 3)"
    # The per-channel affine commutes with the (weight-normalized) bicubic
    # resize and the center crop, so normalize-first == HF's normalize-last.
    return _encode_pixels(image_u8, _crop_resize_weights(int(h)),
                          _crop_resize_weights(int(w)))


class Processor:
    """JAX/Pallas re-implementation of the PyTorch `processor` module."""

    def __init__(self, device=None, llm_name="uitnlp/visobert"):
        self.device = device
        self.llm_name = llm_name

    def forward(self, annotation, ocr, image):
        output = {}
        # TODO(synk): HF AutoTokenizer (string -> token ids) is host-side string
        # processing with no Pallas/TPU equivalent; left unimplemented.
        output["annotation"] = None
        output["ocr"] = None
        output["image"] = {"pixel_values": deit_image_encode(image)}
        return output

    __call__ = forward


if __name__ == "__main__":
    key = jax.random.PRNGKey(0)
    # small synthetic batch of 2 raw 96x128 RGB images (uint8), like PIL input
    B, H, W = 2, 96, 128
    img = jax.random.randint(key, (B, H, W, 3), 0, 256, dtype=jnp.int32)
    img = img.astype(jnp.uint8)

    proc = Processor()
    out = proc("some annotation text", "some ocr text", img)
    pv = jax.block_until_ready(out["image"]["pixel_values"])

    # pure-JAX reference of the module's pixel pipeline in the *unfolded*
    # (resize -> crop -> rescale -> normalize) order used by the HF processor
    x = img.astype(jnp.float32)
    x = jax.image.resize(x, (B, _RESIZE, _RESIZE, 3), method="bicubic")
    off = (_RESIZE - _CROP) // 2
    x = x[:, off:off + _CROP, off:off + _CROP, :]
    x = jnp.transpose(x, (0, 3, 1, 2))
    mean = jnp.asarray(_IMAGE_MEAN, jnp.float32).reshape(1, 3, 1, 1)
    std = jnp.asarray(_IMAGE_STD, jnp.float32).reshape(1, 3, 1, 1)
    ref = (x * _RESCALE - mean) / std

    assert pv.shape == (B, 3, _CROP, _CROP) and pv.dtype == jnp.float32
    err = float(jnp.max(jnp.abs(pv - ref)))
    assert err < 2e-4, f"max abs err {err}"

    print("KERNEL_OK")
</pallas_src>

<mosaic_0001>
module attributes {stable_mosaic.version = 11 : i64} {
  func.func @_norm_vresize_kernel(%arg0: i32, %arg1: i32, %arg2: memref<224x96xf32, #tpu.memory_space<vmem>>, %arg3: memref<1x96x384xi8, #tpu.memory_space<vmem>>, %arg4: memref<1x224x384xf32, #tpu.memory_space<vmem>>) attributes {dimension_semantics = [#tpu.dimension_semantics<parallel>, #tpu.dimension_semantics<parallel>], iteration_bounds = array<i64: 2, 1>, scalar_prefetch = 0 : i64, scratch_operands = 0 : i64, tpu.core_type = #tpu.core_type<tc>, window_params = [{pipeline_mode = #tpu.pipeline_mode<synchronous>, transform_indices = @transform_0, window_bounds = array<i64: 224, 96>}, {transform_indices = @transform_1, window_bounds = array<i64: 1, 96, 384>}, {transform_indices = @transform_2, window_bounds = array<i64: 1, 224, 384>}]} {
    %0 = tpu.iota {dimensions = array<i32: 1>} : vector<1x384xi32>
    %c3_i32 = arith.constant 3 : i32
    %c0_i32 = arith.constant 0 : i32
    %1 = arith.cmpi eq, %c3_i32, %c0_i32 : i32
    %c1_i32 = arith.constant 1 : i32
    %2 = arith.select %1, %c1_i32, %c3_i32 : i32
    %3 = vector.broadcast %2 : i32 to vector<1x384xi32>
    %4 = arith.remsi %0, %3 : vector<1x384xi32>
    %c0_i32_0 = arith.constant 0 : i32
    %5 = vector.broadcast %c0_i32_0 : i32 to vector<1x384xi32>
    %6 = arith.cmpi ne, %4, %5 : vector<1x384xi32>
    %c0_i32_1 = arith.constant 0 : i32
    %7 = vector.broadcast %c0_i32_1 : i32 to vector<1x384xi32>
    %8 = arith.cmpi slt, %4, %7 : vector<1x384xi32>
    %c0_i32_2 = arith.constant 0 : i32
    %9 = arith.cmpi slt, %2, %c0_i32_2 : i32
    %10 = vector.broadcast %9 : i1 to vector<1x384xi1>
    %11 = vector.broadcast %10 : vector<1x384xi1> to vector<1x384xi1>
    %12 = arith.xori %8, %11 : vector<1x384xi1>
    %13 = arith.andi %12, %6 : vector<1x384xi1>
    %14 = vector.broadcast %2 : i32 to vector<1x384xi32>
    %15 = arith.addi %4, %14 : vector<1x384xi32>
    %16 = arith.select %13, %15, %4 : vector<1x384xi1>, vector<1x384xi32>
    %c0_i32_3 = arith.constant 0 : i32
    %17 = vector.broadcast %c0_i32_3 : i32 to vector<1x384xi32>
    %18 = arith.cmpi eq, %16, %17 : vector<1x384xi32>
    %c1_i32_4 = arith.constant 1 : i32
    %19 = vector.broadcast %c1_i32_4 : i32 to vector<1x384xi32>
    %20 = arith.cmpi eq, %16, %19 : vector<1x384xi32>
    %cst = arith.constant 0.0175070036 : f32
    %cst_5 = arith.constant 0.0174291935 : f32
    %21 = vector.broadcast %cst : f32 to vector<1x384xf32>
    %22 = vector.broadcast %cst_5 : f32 to vector<1x384xf32>
    %23 = arith.select %20, %21, %22 : vector<1x384xi1>, vector<1x384xf32>
    %cst_6 = arith.constant 0.0171247534 : f32
    %24 = vector.broadcast %cst_6 : f32 to vector<1x384xf32>
    %25 = arith.select %18, %24, %23 : vector<1x384xi1>, vector<1x384xf32>
    %c0_i32_7 = arith.constant 0 : i32
    %26 = vector.broadcast %c0_i32_7 : i32 to vector<1x384xi32>
    %27 = arith.cmpi eq, %16, %26 : vector<1x384xi32>
    %c1_i32_8 = arith.constant 1 : i32
    %28 = vector.broadcast %c1_i32_8 : i32 to vector<1x384xi32>
    %29 = arith.cmpi eq, %16, %28 : vector<1x384xi32>
    %cst_9 = arith.constant -2.03571439 : f32
    %cst_10 = arith.constant -1.80444443 : f32
    %30 = vector.broadcast %cst_9 : f32 to vector<1x384xf32>
    %31 = vector.broadcast %cst_10 : f32 to vector<1x384xf32>
    %32 = arith.select %29, %30, %31 : vector<1x384xi1>, vector<1x384xf32>
    %cst_11 = arith.constant -2.11790395 : f32
    %33 = vector.broadcast %cst_11 : f32 to vector<1x384xf32>
    %34 = arith.select %27, %33, %32 : vector<1x384xi1>, vector<1x384xf32>
    %c0 = arith.constant 0 : index
    %c0_12 = arith.constant 0 : index
    %c0_13 = arith.constant 0 : index
    %35 = vector.load %arg3[%c0, %c0_12, %c0_13] : memref<1x96x384xi8, #tpu.memory_space<vmem>>, vector<1x96x384xi8>
    %36 = vector.shape_cast %35 : vector<1x96x384xi8> to vector<96x384xi8>
    %37 = arith.uitofp %36 : vector<96x384xi8> to vector<96x384xf32>
    %c0_14 = arith.constant 0 : index
    %c0_15 = arith.constant 0 : index
    %38 = vector.load %arg2[%c0_14, %c0_15] : memref<224x96xf32, #tpu.memory_space<vmem>>, vector<224x96xf32>
    %cst_16 = arith.constant dense<0.000000e+00> : vector<224x384xf32>
    %39 = tpu.matmul %38, %37, %cst_16 {dimension_numbers = #tpu.dot_dimension_numbers<[1], [0], [0], [1], [0, 0, 1, 1], [], []>} : vector<224x96xf32>, vector<96x384xf32>, vector<224x384xf32> -> vector<224x384xf32>
    %40 = vector.broadcast %25 : vector<1x384xf32> to vector<224x384xf32>
    %41 = arith.mulf %39, %40 : vector<224x384xf32>
    %42 = vector.broadcast %34 : vector<1x384xf32> to vector<224x384xf32>
    %43 = arith.addf %41, %42 : vector<224x384xf32>
    %c0_17 = arith.constant 0 : index
    %c0_18 = arith.constant 0 : index
    %c0_19 = arith.constant 0 : index
    %44 = vector.load %arg4[%c0_17, %c0_18, %c0_19] : memref<1x224x384xf32, #tpu.memory_space<vmem>>, vector<1x224x384xf32>
    %45 = vector.shape_cast %44 : vector<1x224x384xf32> to vector<224x384xf32>
    %46 = vector.shape_cast %43 : vector<224x384xf32> to vector<1x224x384xf32>
    tpu.vector_store %arg4[%c0_17, %c0_18, %c0_19], %46 {strides = array<i32>} : memref<1x224x384xf32, #tpu.memory_space<vmem>>, vector<1x224x384xf32>,
    return
  }
  func.func @transform_0(%arg0: i32, %arg1: i32) -> (i32, i32) {
    %c0_i32 = arith.constant 0 : i32
    %c0_i32_0 = arith.constant 0 : i32
    %c0_i32_1 = arith.constant 0 : i32
    return %c0_i32, %c0_i32_0 : i32, i32
  }
  func.func @transform_1(%arg0: i32, %arg1: i32) -> (i32, i32, i32) {
    %c0_i32 = arith.constant 0 : i32
    %c0_i32_0 = arith.constant 0 : i32
    return %arg0, %c0_i32, %arg1 : i32, i32, i32
  }
  func.func @transform_2(%arg0: i32, %arg1: i32) -> (i32, i32, i32) {
    %c0_i32 = arith.constant 0 : i32
    %c0_i32_0 = arith.constant 0 : i32
    return %arg0, %c0_i32, %arg1 : i32, i32, i32
  }
}

</mosaic_0001>

<bundles_post_ra>
// kernel: _encode_pixels.1
= control target key start
LH: loop header
LB: loop body
LE: loop exit
PB: predicated region body
PF: predicated region fallthrough
CT: control target
= control target key end

     0   :  { %s1532_s9 = smov 0   ;;  %s1534_s10 = smov 0   ;;  %s2081_s0 = inlined_call_operand.vmem [shape: f32[224,96], index: 0, kind: input, shape index: {}]   ;;  %s2082_s1 = inlined_call_operand.vmem [shape: u8[2,96,384], index: 1, kind: input, shape index: {}]   ;;  %s2083_s2 = inlined_call_operand.vmem [shape: f32[2,224,384], index: 2, kind: output, shape index: {}]  }
   0x1   :  { %s1536_s11 = smov 0  }
   0x2 LB: > { %s24_s12 = sadd.s32 1, %s1508_s10  ;;  %p1264_p0 = scmp.ge.s32.totalorder %s1512_s11, 1  ;;  %s1512_s11 = sphi %s1536_s11, %s12_s11   ;;  %s1508_s10 = sphi %s1534_s10, %s2085_s10   ;;  %s1504_s9 = sphi %s1532_s9, %s2084_s9  }
   0x3   : > { %p26_p1 = scmp.ge.s32.totalorder %s24_s12, 2  ;;  %p133_p2 = scmp.lt.s32.totalorder %s1512_s11, 3 }
   0x5   : > { %s2087_s12 = smov (%p26_p1, %s24_s12), 0  ;;  %p134_p3 = pnand %p1264_p0, %p133_p2 }
   0x6   : > { %p164_p4 = scmp.lt.s32.totalorder (!%p134_p3), %s1504_s9, 1 }
   0x7   : > { %137 = sbr.rel (%p134_p3) target bundleno = 328 (0x148), region = 28 }
   0xc   : > { %v1514_v0 = vmov 0.0   ;;  %s2089_s9 = smov (!%p164_p4, %s1504_s9), 1  ;;  %vm398_vm0 = vcmask 785408  }
   0xd   : > { %547 = vmatprep.mubr.f32.mxu0 %v1514_v0  ;;  %673 = vmatprep.mubr.f32.mxu1 %v1514_v0  ;;  %s1455_s13 = smul.u32 72, %s2089_s9 }
   0xe   : > { %s1456_s25 = smul.u32 672, %s2089_s9 }
   0xf   : > { %s1558_s16 = scalar_lea.vmem %s2082_s1, %s1455_s13 }
  0x10   : > { %v260_v1 = vld [vmem:[%s1558_s16 + $0x38] sm:$0xff]  ;;  %v259_v2 = vld [vmem:[%s1558_s16 + $0x30] sm:$0xff]  ;;  %v257_v17 = vld [vmem:[%s1558_s16 + $0x20] sm:$0xff]  ;;  %s1807_s9 = scalar_lea.vmem %s2083_s2, %s1456_s25 }
  0x11   : > { %v296_v3 = vunpack.c.3.s8 %v260_v1  ;;  %v295_v4 = vunpack.c.3.s8 %v259_v2  ;;  %v293_v5 = vunpack.c.2.s8 %v260_v1  ;;  %v292_v6 = vunpack.c.2.s8 %v259_v2  ;;  %v256_v18 = vld [vmem:[%s1558_s16 + $0x18] sm:$0xff]  ;;  %v254_v41 = vld [vmem:[%s1558_s16 + $0x8] sm:$0xff]  ;;  %v253_v42 = vld [vmem:[%s1558_s16] sm:$0xff] }
  0x12   : > { %v290_v7 = vunpack.c.1.s8 %v260_v1  ;;  %v289_v8 = vunpack.c.1.s8 %v259_v2  ;;  %v287_v9 = vunpack.c.0.s8 %v260_v1  ;;  %v286_v10 = vunpack.c.0.s8 %v259_v2  ;;  %v261_v1 = vld [vmem:[%s1558_s16 + $0x40] sm:$0xff] }
  0x13   : > { %v332_v11 = vand.u32 255, %v296_v3  ;;  %v331_v12 = vand.u32 255, %v295_v4  ;;  %v329_v13 = vand.u32 255, %v293_v5  ;;  %v328_v14 = vand.u32 255, %v292_v6 }
  0x14   : > { %v326_v15 = vand.u32 255, %v290_v7  ;;  %v325_v16 = vand.u32 255, %v289_v8  ;;  %v323_v22 = vand.u32 255, %v287_v9  ;;  %v322_v25 = vand.u32 255, %v286_v10 }
  0x15   : > { %v368_v19 = vcvt.s32.f32 %v332_v11  ;;  %v367_v20 = vcvt.s32.f32 %v331_v12  ;;  %v365_v21 = vcvt.s32.f32 %v329_v13  ;;  %v364_v23 = vcvt.s32.f32 %v328_v14 }
  0x16   : > { %v362_v24 = vcvt.s32.f32 %v326_v15  ;;  %v284_v26 = vunpack.c.3.s8 %v257_v17  ;;  %v283_v27 = vunpack.c.3.s8 %v256_v18  ;;  %v281_v28 = vunpack.c.2.s8 %v257_v17 }
  0x17   : > { %491 = vmatprep.subr.mxu0 %v368_v19  ;;  %1431 = vmatprep.subr.mxu1 %v368_v19  ;;  %v280_v29 = vunpack.c.2.s8 %v256_v18  ;;  %v361_v30 = vcvt.s32.f32 %v325_v16  ;;  %v278_v31 = vunpack.c.1.s8 %v257_v17  ;;  %v277_v32 = vunpack.c.1.s8 %v256_v18 }
  0x18   : > { %492 = vmatpush1.msra.mxu0 %v367_v20  ;;  %1443 = vmatpush1.msra.mxu1 %v367_v20  ;;  %v275_v33 = vunpack.c.0.s8 %v257_v17  ;;  %v359_v34 = vcvt.s32.f32 %v323_v22  ;;  %v320_v35 = vand.u32 255, %v284_v26  ;;  %v319_v36 = vand.u32 255, %v283_v27 }
  0x19   : > { %493 = vmatprep.subr.mxu0 %v365_v21  ;;  %1432 = vmatprep.subr.mxu1 %v365_v21  ;;  %v317_v37 = vand.u32 255, %v281_v28  ;;  %v358_v38 = vcvt.s32.f32 %v322_v25  ;;  %v316_v39 = vand.u32 255, %v280_v29  ;;  %v274_v40 = vunpack.c.0.s8 %v256_v18  ;;  %v1576_v25 = vld [vmem:[%s2081_s0 + $0xa8] sm:$0xff] }
  0x1a   : > { %494 = vmatpush1.msra.mxu0 %v364_v23  ;;  %1444 = vmatpush1.msra.mxu1 %v364_v23  ;;  %v356_v43 = vcvt.s32.f32 %v320_v35  ;;  %v314_v44 = vand.u32 255, %v278_v31  ;;  %v355_v45 = vcvt.s32.f32 %v319_v36  ;;  %v313_v46 = vand.u32 255, %v277_v32  ;;  %v258_v23 = vld [vmem:[%s1558_s16 + $0x28] sm:$0xff]  ;;  %v1591_v32 = vld [vmem:[%s2081_s0 + $0xb0] sm:$0xff] }
  0x1b   : > { %495 = vmatprep.subr.mxu0 %v362_v24  ;;  %1433 = vmatprep.subr.mxu1 %v362_v24  ;;  %v311_v47 = vand.u32 255, %v275_v33  ;;  %v353_v48 = vcvt.s32.f32 %v317_v37  ;;  %v272_v49 = vunpack.c.3.s8 %v254_v41  ;;  %v271_v50 = vunpack.c.3.s8 %v253_v42  ;;  %v1571_v24 = vld [vmem:[%s2081_s0] sm:$0xff]  ;;  %v1586_v31 = vld [vmem:[%s2081_s0 + $0x8] sm:$0xff] }
  0x1c   : > { %496 = vmatpush1.msra.mxu0 %v361_v30  ;;  %1445 = vmatpush1.msra.mxu1 %v361_v30  ;;  %v269_v51 = vunpack.c.2.s8 %v254_v41  ;;  %v352_v52 = vcvt.s32.f32 %v316_v39  ;;  %v310_v53 = vand.u32 255, %v274_v40  ;;  %v268_v54 = vunpack.c.2.s8 %v253_v42  ;;  %v1603_v39 = vld [vmem:[%s2081_s0 + $0x10] sm:$0xff] }
  0x1d   : > { %497 = vmatprep.subr.mxu0 %v359_v34  ;;  %1434 = vmatprep.subr.mxu1 %v359_v34  ;;  %v350_v55 = vcvt.s32.f32 %v314_v44  ;;  %v308_v56 = vand.u32 255, %v272_v49  ;;  %v266_v57 = vunpack.c.1.s8 %v254_v41  ;;  %v349_v58 = vcvt.s32.f32 %v313_v46  ;;  %v1619_v46 = vld [vmem:[%s2081_s0 + $0x18] sm:$0xff] }
  0x1e   : > { %498 = vmatpush1.msra.mxu0 %v358_v38  ;;  %1446 = vmatpush1.msra.mxu1 %v358_v38  ;;  %v307_v59 = vand.u32 255, %v271_v50  ;;  %v265_v60 = vunpack.c.1.s8 %v253_v42  ;;  %v347_v61 = vcvt.s32.f32 %v311_v47  ;;  %v305_v62 = vand.u32 255, %v269_v51  ;;  %v255_v38 = vld [vmem:[%s1558_s16 + $0x10] sm:$0xff]  ;;  %v1625_v50 = vld [vmem:[%s2081_s0 + $0xc0] sm:$0xff] }
  0x1f   : > { %499 = vmatprep.subr.mxu0 %v356_v43  ;;  %1435 = vmatprep.subr.mxu1 %v356_v43  ;;  %v263_v63 = vunpack.c.0.s8 %v254_v41  ;;  %v346_v2 = vcvt.s32.f32 %v310_v53  ;;  %v304_v3 = vand.u32 255, %v268_v54  ;;  %v262_v4 = vunpack.c.0.s8 %v253_v42  ;;  %v1609_v42 = vld [vmem:[%s2081_s0 + $0xb8] sm:$0xff]  ;;  %v374_v54 = vld [vmem:[%s2081_s0 + $0x20] sm:$0xff] }
  0x20   : > { %500 = vmatpush1.msra.mxu0 %v355_v45  ;;  %1447 = vmatpush1.msra.mxu1 %v355_v45  ;;  %v344_v5 = vcvt.s32.f32 %v308_v56  ;;  %v302_v6 = vand.u32 255, %v266_v57  ;;  %v343_v7 = vcvt.s32.f32 %v307_v59  ;;  %v301_v8 = vand.u32 255, %v265_v60 }
  0x21   : > { %501 = vmatprep.subr.mxu0 %v353_v48  ;;  %1436 = vmatprep.subr.mxu1 %v353_v48  ;;  %v297_v9 = vunpack.c.3.s8 %v261_v1  ;;  %v341_v10 = vcvt.s32.f32 %v305_v62  ;;  %v299_v11 = vand.u32 255, %v263_v63  ;;  %v340_v12 = vcvt.s32.f32 %v304_v3  ;;  %v376_v3 = vld [vmem:[%s2081_s0 + $0x30] sm:$0xff] }
  0x22   : > { %502 = vmatpush1.msra.mxu0 %v352_v52  ;;  %1448 = vmatpush1.msra.mxu1 %v352_v52  ;;  %v298_v13 = vand.u32 255, %v262_v4  ;;  %v294_v14 = vunpack.c.2.s8 %v261_v1  ;;  %v338_v15 = vcvt.s32.f32 %v302_v6  ;;  %v337_v16 = vcvt.s32.f32 %v301_v8  ;;  %v377_v6 = vld [vmem:[%s2081_s0 + $0x38] sm:$0xff]  ;;  %v379_v8 = vld [vmem:[%s2081_s0 + $0x48] sm:$0xff] }
  0x23   : > { %503 = vmatprep.subr.mxu0 %v350_v55  ;;  %1437 = vmatprep.subr.mxu1 %v350_v55  ;;  %v333_v17 = vand.u32 255, %v297_v9  ;;  %v335_v18 = vcvt.s32.f32 %v299_v11  ;;  %v291_v19 = vunpack.c.1.s8 %v261_v1  ;;  %v288_v22 = vunpack.c.0.s8 %v261_v1  ;;  %v1651_v1 = vld [vmem:[%s2081_s0 + $0xd0] sm:$0xff]  ;;  %v382_v11 = vld [vmem:[%s2081_s0 + $0x60] sm:$0xff] }
  0x24   : > { %504 = vmatpush1.msra.mxu0 %v349_v58  ;;  %1449 = vmatpush1.msra.mxu1 %v349_v58  ;;  %v334_v20 = vcvt.s32.f32 %v298_v13  ;;  %v330_v21 = vand.u32 255, %v294_v14  ;;  %v285_v29 = vunpack.c.3.s8 %v258_v23  ;;  %v282_v33 = vunpack.c.2.s8 %v258_v23  ;;  %v1638_v58 = vld [vmem:[%s2081_s0 + $0xc8] sm:$0xff]  ;;  %v380_v9 = vld [vmem:[%s2081_s0 + $0x50] sm:$0xff]  ;;  %v385_v14 = vld [vmem:[%s2081_s0 + $0x78] sm:$0xff] }
  0x25   : > { %505 = vmatprep.subr.mxu0 %v347_v61  ;;  %1438 = vmatprep.subr.mxu1 %v347_v61  ;;  %v369_v26 = vcvt.s32.f32 %v333_v17  ;;  %v327_v27 = vand.u32 255, %v291_v19  ;;  %v324_v30 = vand.u32 255, %v288_v22  ;;  %v279_v36 = vunpack.c.1.s8 %v258_v23  ;;  %v375_v61 = vld [vmem:[%s2081_s0 + $0x28] sm:$0xff]  ;;  %v384_v13 = vld [vmem:[%s2081_s0 + $0x70] sm:$0xff]  ;;  %v390_v19 = vld [vmem:[%s2081_s0 + $0xa0] sm:$0xff] }
  0x26   : > { %506 = vmatpush1.msra.mxu0 %v346_v2  ;;  %1450 = vmatpush1.msra.mxu1 %v346_v2  ;;  %v366_v28 = vcvt.s32.f32 %v330_v21  ;;  %v321_v35 = vand.u32 255, %v285_v29  ;;  %v318_v40 = vand.u32 255, %v282_v33  ;;  %v276_v41 = vunpack.c.0.s8 %v258_v23  ;;  %v388_v17 = vld [vmem:[%s2081_s0 + $0x90] sm:$0xff] }
  0x27   : > { %507 = vmatprep.subr.mxu0 %v344_v5  ;;  %1439 = vmatprep.subr.mxu1 %v344_v5  ;;  %v363_v34 = vcvt.s32.f32 %v327_v27  ;;  %v360_v37 = vcvt.s32.f32 %v324_v30  ;;  %v315_v44 = vand.u32 255, %v279_v36  ;;  %v273_v45 = vunpack.c.3.s8 %v255_v38  ;;  %v1664_v5 = vld [vmem:[%s2081_s0 + $0xd8] sm:$0xff] }
  0x28   : > { %508 = vmatpush1.msra.mxu0 %v343_v7  ;;  %1451 = vmatpush1.msra.mxu1 %v343_v7  ;;  %v357_v43 = vcvt.s32.f32 %v321_v35  ;;  %v354_v47 = vcvt.s32.f32 %v318_v40  ;;  %v312_v48 = vand.u32 255, %v276_v41  ;;  %v270_v49 = vunpack.c.2.s8 %v255_v38  ;;  %v378_v7 = vld [vmem:[%s2081_s0 + $0x40] sm:$0xff] }
  0x29   : > { %509 = vmatprep.subr.mxu0 %v341_v10  ;;  %1440 = vmatprep.subr.mxu1 %v341_v10  ;;  %v351_v51 = vcvt.s32.f32 %v315_v44  ;;  %v309_v52 = vand.u32 255, %v273_v45  ;;  %v267_v53 = vunpack.c.1.s8 %v255_v38  ;;  %v264_v57 = vunpack.c.0.s8 %v255_v38  ;;  %v381_v10 = vld [vmem:[%s2081_s0 + $0x58] sm:$0xff] }
  0x2a   : > { %510 = vmatpush1.msra.mxu0 %v340_v12  ;;  %1452 = vmatpush1.msra.mxu1 %v340_v12  ;;  %v348_v55 = vcvt.s32.f32 %v312_v48  ;;  %v306_v56 = vand.u32 255, %v270_v49  ;;  %v383_v12 = vld [vmem:[%s2081_s0 + $0x68] sm:$0xff]  ;;  %v1516_v41 = vmov -1.8044444  }
  0x2b   : > { %511 = vmatprep.subr.mxu0 %v338_v15  ;;  %1441 = vmatprep.subr.mxu1 %v338_v15  ;;  %v345_v59 = vcvt.s32.f32 %v309_v52  ;;  %v303_v60 = vand.u32 255, %v267_v53  ;;  %v300_v63 = vand.u32 255, %v264_v57  ;;  %v386_v15 = vld [vmem:[%s2081_s0 + $0x80] sm:$0xff] }
  0x2c   : > { %512 = vmatpush1.msra.mxu0 %v337_v16  ;;  %1453 = vmatpush1.msra.mxu1 %v337_v16  ;;  %v342_v62 = vcvt.s32.f32 %v306_v56  ;;  %v387_v16 = vld [vmem:[%s2081_s0 + $0x88] sm:$0xff] }
  0x2d   : > { %513 = vmatprep.subr.mxu0 %v335_v18  ;;  %1442 = vmatprep.subr.mxu1 %v335_v18  ;;  %v339_v2 = vcvt.s32.f32 %v303_v60  ;;  %v336_v4 = vcvt.s32.f32 %v300_v63  ;;  %v389_v18 = vld [vmem:[%s2081_s0 + $0x98] sm:$0xff] }
  0x2e   : > { %514 = vmatpush1.msra.mxu0 %v334_v20  ;;  %1454 = vmatpush1.msra.mxu1 %v334_v20  ;;  %v183_v20 = vlaneseq }
  0x2f   : > { %1267 = vmatmul.mubr.msk.f32.vlgmr.msra.gmra.mxu0 %vm398_vm0, %v1571_v24  ;;  %1288 = vmatmul.mubr.msk.f32.vlgmr.msra.gmra.mxu1 %vm398_vm0, %v1576_v25 }
  0x30   : > { %1365 = vmatprep.subr.mxu1 %v369_v26  ;;  %553 = vmatprep.mubr.f32.mxu0 %v1514_v0  ;;  %v184_v21 = vand.u32 127, %v183_v20 }
  0x31   : > { %1366 = vmatpush3.msra.mxu1 %v369_v26  ;;  %679 = vmatprep.mubr.f32.mxu1 %v1514_v0 }
  0x32   : > { %1367 = vmatprep.subr.mxu1 %v366_v28  ;;  %v185_v22 = vadd.s32 128, %v184_v21 }
  0x33   : > { %1268 = vmatmul.mubr.msk.f32.gmra.mxu0 %vm398_vm0, %v1586_v31  ;;  %1289 = vmatmul.mubr.msk.f32.gmra.mxu1 %vm398_vm0, %v1591_v32 }
  0x34   : > { %1368 = vmatpush3.msra.mxu1 %v366_v28  ;;  %559 = vmatprep.mubr.f32.mxu0 %v1514_v0 }
  0x35   : > { %1369 = vmatprep.subr.mxu1 %v363_v34  ;;  %685 = vmatprep.mubr.f32.mxu1 %v1514_v0 }
  0x36   : > { %1370 = vmatpush3.msra.mxu1 %v363_v34  ;;  %v186_v34 = vadd.s32 256, %v184_v21 }
  0x37   : > { %1371 = vmatprep.subr.mxu1 %v360_v37  ;;  %1269 = vmatmul.mubr.msk.f32.gmra.mxu0 %vm398_vm0, %v1603_v39 }
  0x38   : > { %1290 = vmatmul.mubr.msk.f32.gmra.mxu1 %vm398_vm0, %v1609_v42  ;;  %565 = vmatprep.mubr.f32.mxu0 %v1514_v0 }
  0x39   : > { %1372 = vmatpush3.msra.mxu1 %v360_v37  ;;  %691 = vmatprep.mubr.f32.mxu1 %v1514_v0  ;;  %v1787_v37 = vmul.u32.u64.low 2863311531, %v186_v34  ;;  %v1788_v38 = vmul.u32.u64.high 2863311531, %v186_v34, %v1787_v37 }
  0x3a   : > { %1373 = vmatprep.subr.mxu1 %v357_v43 }
  0x3b   : > { %1374 = vmatpush3.msra.mxu1 %v357_v43  ;;  %1270 = vmatmul.mubr.msk.f32.gmra.mxu0 %vm398_vm0, %v1619_v46 }
  0x3c   : > { %1291 = vmatmul.mubr.msk.f32.gmra.mxu1 %vm398_vm0, %v1625_v50  ;;  %1375 = vmatprep.subr.mxu1 %v354_v47 }
  0x3d   : > { %1376 = vmatpush3.msra.mxu1 %v354_v47  ;;  %571 = vmatprep.mubr.f32.mxu0 %v1514_v0 }
  0x3e   : > { %1377 = vmatprep.subr.mxu1 %v351_v51  ;;  %697 = vmatprep.mubr.f32.mxu1 %v1514_v0 }
  0x3f   : > { %1378 = vmatpush3.msra.mxu1 %v351_v51  ;;  %1271 = vmatmul.mubr.msk.f32.gmra.mxu0 %vm398_vm0, %v374_v54 }
  0x40   : > { %1292 = vmatmul.mubr.msk.f32.gmra.mxu1 %vm398_vm0, %v1638_v58  ;;  %1379 = vmatprep.subr.mxu1 %v348_v55 }
  0x41   : > { %1380 = vmatpush3.msra.mxu1 %v348_v55  ;;  %577 = vmatprep.mubr.f32.mxu0 %v1514_v0 }
  0x42   : > { %703 = vmatprep.mubr.f32.mxu1 %v1514_v0  ;;  %1381 = vmatprep.subr.mxu1 %v345_v59 }
  0x43   : > { %1272 = vmatmul.mubr.msk.f32.gmra.mxu0 %vm398_vm0, %v375_v61  ;;  %1382 = vmatpush3.msra.mxu1 %v345_v59 }
  0x44   : > { %1293 = vmatmul.mubr.msk.f32.gmra.mxu1 %vm398_vm0, %v1651_v1  ;;  %1383 = vmatprep.subr.mxu1 %v342_v62 }
  0x45   : > { %1384 = vmatpush3.msra.mxu1 %v342_v62  ;;  %583 = vmatprep.mubr.f32.mxu0 %v1514_v0 }
  0x46   : > { %709 = vmatprep.mubr.f32.mxu1 %v1514_v0  ;;  %1385 = vmatprep.subr.mxu1 %v339_v2 }
  0x47   : > { %1273 = vmatmul.mubr.msk.f32.gmra.mxu0 %vm398_vm0, %v376_v3  ;;  %1386 = vmatpush3.msra.mxu1 %v339_v2 }
  0x48   : > { %1294 = vmatmul.mubr.msk.f32.gmra.mxu1 %vm398_vm0, %v1664_v5  ;;  %1387 = vmatprep.subr.mxu1 %v336_v4 }
  0x49   : > { %589 = vmatprep.mubr.f32.mxu0 %v1514_v0  ;;  %1388 = vmatpush3.msra.mxu1 %v336_v4 }
  0x4a   : > { %1389 = vmatprep.mubr.msk.f32.mxu1 %vm398_vm0, %v1571_v24  ;;  %v1779_v23 = vmul.u32.u64.low 2863311531, %v184_v21  ;;  %v1780_v24 = vmul.u32.u64.high 2863311531, %v184_v21, %v1779_v23 }
  0x4b   : > { %1274 = vmatmul.mubr.msk.f32.gmra.mxu0 %vm398_vm0, %v377_v6 }
  0x4c   : > { %1390 = vmatmul.mubr.msk.f32.vlgmr.msra.gmra.mxu1 %vm398_vm0, %v1586_v31  ;;  %595 = vmatprep.mubr.f32.mxu0 %v1514_v0  ;;  %v193_v27 = vshrl.u32 %v1780_v24, 1 }
  0x4d   : > { %1392 = vmatprep.mubr.msk.f32.mxu1 %vm398_vm0, %v1603_v39  ;;  %v1515_v39 = vmov 0.017429193  }
  0x4e   : > { %v194_v28 = vmul.u32 3, %v193_v27 }
  0x4f   : > { %1275 = vmatmul.mubr.msk.f32.gmra.mxu0 %vm398_vm0, %v378_v7 }
  0x50   : > { %1393 = vmatmul.mubr.msk.f32.gmra.mxu1 %vm398_vm0, %v1619_v46  ;;  %601 = vmatprep.mubr.f32.mxu0 %v1514_v0  ;;  %v195_v30 = vsub.s32 %v184_v21, %v194_v28 }
  0x51   : > { %1395 = vmatprep.mubr.msk.f32.mxu1 %vm398_vm0, %v374_v54 }
  0x52   : > { %vm220_vm1 = vcmp.ne.s32.totalorder %v195_v30, 0  ;;  %vm223_vm2 = vcmp.lt.s32.totalorder %v195_v30, 0 }
  0x53   : > { %1276 = vmatmul.mubr.msk.f32.gmra.mxu0 %vm398_vm0, %v379_v8  ;;  %vm226_vm5 = vmand %vm223_vm2, %vm220_vm1 }
  0x54   : > { %1396 = vmatmul.mubr.msk.f32.gmra.mxu1 %vm398_vm0, %v375_v61  ;;  %607 = vmatprep.mubr.f32.mxu0 %v1514_v0 }
  0x55   : > { %1398 = vmatprep.mubr.msk.f32.mxu1 %vm398_vm0, %v376_v3 }
  0x57   : > { %1277 = vmatmul.mubr.msk.f32.gmra.mxu0 %vm398_vm0, %v380_v9 }
  0x58   : > { %1399 = vmatmul.mubr.msk.f32.gmra.mxu1 %vm398_vm0, %v377_v6  ;;  %613 = vmatprep.mubr.f32.mxu0 %v1514_v0 }
  0x59   : > { %1401 = vmatprep.mubr.msk.f32.mxu1 %vm398_vm0, %v378_v7 }
  0x5b   : > { %1278 = vmatmul.mubr.msk.f32.gmra.mxu0 %vm398_vm0, %v381_v10 }
  0x5c   : > { %1402 = vmatmul.mubr.msk.f32.gmra.mxu1 %vm398_vm0, %v379_v8  ;;  %619 = vmatprep.mubr.f32.mxu0 %v1514_v0 }
  0x5d   : > { %1404 = vmatprep.mubr.msk.f32.mxu1 %vm398_vm0, %v380_v9 }
  0x5f   : > { %1279 = vmatmul.mubr.msk.f32.gmra.mxu0 %vm398_vm0, %v382_v11 }
  0x60   : > { %1405 = vmatmul.mubr.msk.f32.gmra.mxu1 %vm398_vm0, %v381_v10  ;;  %625 = vmatprep.mubr.f32.mxu0 %v1514_v0 }
  0x61   : > { %1407 = vmatprep.mubr.msk.f32.mxu1 %vm398_vm0, %v382_v11 }
  0x63   : > { %1280 = vmatmul.mubr.msk.f32.gmra.mxu0 %vm398_vm0, %v383_v12 }
  0x64   : > { %1408 = vmatmul.mubr.msk.f32.gmra.mxu1 %vm398_vm0, %v383_v12  ;;  %631 = vmatprep.mubr.f32.mxu0 %v1514_v0 }
  0x65   : > { %1410 = vmatprep.mubr.msk.f32.mxu1 %vm398_vm0, %v384_v13 }
  0x67   : > { %1281 = vmatmul.mubr.msk.f32.gmra.mxu0 %vm398_vm0, %v384_v13 }
  0x68   : > { %1411 = vmatmul.mubr.msk.f32.gmra.mxu1 %vm398_vm0, %v385_v14  ;;  %637 = vmatprep.mubr.f32.mxu0 %v1514_v0 }
  0x69   : > { %1413 = vmatprep.mubr.msk.f32.mxu1 %vm398_vm0, %v386_v15 }
  0x6b   : > { %1282 = vmatmul.mubr.msk.f32.gmra.mxu0 %vm398_vm0, %v385_v14 }
  0x6c   : > { %1414 = vmatmul.mubr.msk.f32.gmra.mxu1 %vm398_vm0, %v387_v16  ;;  %643 = vmatprep.mubr.f32.mxu0 %v1514_v0 }
  0x6d   : > { %1416 = vmatprep.mubr.msk.f32.mxu1 %vm398_vm0, %v388_v17 }
  0x6f   : > { %1283 = vmatmul.mubr.msk.f32.gmra.mxu0 %vm398_vm0, %v386_v15 }
  0x70   : > { %1417 = vmatmul.mubr.msk.f32.gmra.mxu1 %vm398_vm0, %v389_v18  ;;  %649 = vmatprep.mubr.f32.mxu0 %v1514_v0 }
  0x71   : > { %1419 = vmatprep.mubr.msk.f32.mxu1 %vm398_vm0, %v390_v19 }
  0x73   : > { %1284 = vmatmul.mubr.msk.f32.gmra.mxu0 %vm398_vm0, %v387_v16 }
  0x74   : > { %1420 = vmatmul.mubr.msk.f32.gmra.mxu1 %vm398_vm0, %v1576_v25  ;;  %655 = vmatprep.mubr.f32.mxu0 %v1514_v0  ;;  %v1782_v25 = vmul.u32.u64.low 2863311531, %v185_v22  ;;  %v1783_v26 = vmul.u32.u64.high 2863311531, %v185_v22, %v1782_v25 }
  0x75   : > { %1422 = vmatprep.mubr.msk.f32.mxu1 %vm398_vm0, %v1591_v32  ;;  %v229_v32 = vadd.s32 3, %v195_v30 }
  0x77   : > { %1285 = vmatmul.mubr.msk.f32.gmra.mxu0 %vm398_vm0, %v388_v17  ;;  %v232_v35 = vsel %vm226_vm5, %v229_v32, %v195_v30 }
  0x78   : > { %1423 = vmatmul.mubr.msk.f32.gmra.mxu1 %vm398_vm0, %v1609_v42  ;;  %661 = vmatprep.mubr.f32.mxu0 %v1514_v0  ;;  %vm238_vm7 = vcmp.eq.s32.totalorder %v232_v35, 1  ;;  %vm235_vm9 = vcmp.eq.s32.totalorder %v232_v35, 0 }
  0x79   : > { %1425 = vmatprep.mubr.msk.f32.mxu1 %vm398_vm0, %v1625_v50  ;;  %v241_v40 = vsel %vm238_vm7, 0.017507004, %v1515_v39  ;;  %v247_v42 = vsel %vm238_vm7, -2.0357144, %v1516_v41  ;;  %v215_v50 = vshrl.u32 %v1788_v38, 1 }
  0x7a   : > { %v1794_v44 = vsel %vm235_vm9, 0.017124753, %v241_v40  ;;  %v1797_v46 = vsel %vm235_vm9, -2.117904, %v247_v42 }
  0x7b   : > { %1286 = vmatmul.mubr.msk.f32.gmra.mxu0 %vm398_vm0, %v389_v18  ;;  %v216_v62 = vmul.u32 3, %v215_v50 }
  0x7c   : > { %1426 = vmatmul.mubr.msk.f32.gmra.mxu1 %vm398_vm0, %v1638_v58  ;;  %667 = vmatprep.mubr.f32.mxu0 %v1514_v0  ;;  %v204_v0 = vshrl.u32 %v1783_v26, 1 }
  0x7d   : > { %1428 = vmatprep.mubr.msk.f32.mxu1 %vm398_vm0, %v1651_v1  ;;  %v217_v11 = vsub.s32 %v186_v34, %v216_v62 }
  0x7e   : > { %v205_v29 = vmul.u32 3, %v204_v0 }
  0x7f   : > { %1287 = vmatmul.mubr.msk.f32.gmra.mxu0 %vm398_vm0, %v390_v19  ;;  %vm222_vm11 = vcmp.ne.s32.totalorder %v217_v11, 0  ;;  %vm225_vm12 = vcmp.lt.s32.totalorder %v217_v11, 0 }
  0x80   : > { %1429 = vmatmul.mubr.msk.f32.gmra.mxu1 %vm398_vm0, %v1664_v5  ;;  %v206_v31 = vsub.s32 %v185_v22, %v205_v29  ;;  %v231_v29 = vadd.s32 3, %v217_v11  ;;  %vm228_vm13 = vmand %vm225_vm12, %vm222_vm11 }
  0x82   : > { %vm221_vm3 = vcmp.ne.s32.totalorder %v206_v31, 0  ;;  %vm224_vm4 = vcmp.lt.s32.totalorder %v206_v31, 0  ;;  %v230_v33 = vadd.s32 3, %v206_v31 }
  0x83   : > { %vm227_vm6 = vmand %vm224_vm4, %vm221_vm3 }
  0x84   : > { %v233_v36 = vsel %vm227_vm6, %v230_v33, %v206_v31 }
  0x85   : > { %vm239_vm8 = vcmp.eq.s32.totalorder %v233_v36, 1  ;;  %vm236_vm10 = vcmp.eq.s32.totalorder %v233_v36, 0 }
  0x86   : > { %v242_v43 = vsel %vm239_vm8, 0.017507004, %v1515_v39  ;;  %v248_v45 = vsel %vm239_vm8, -2.0357144, %v1516_v41 }
  0x87   : > { %v1799_v49 = vsel %vm236_vm10, 0.017124753, %v242_v43  ;;  %v1809_v53 = vsel %vm236_vm10, -2.117904, %v248_v45  ;;  %v234_v45 = vsel %vm228_vm13, %v231_v29, %v217_v11 }
  0x88   : > { %vm240_vm14 = vcmp.eq.s32.totalorder %v234_v45, 1  ;;  %vm237_vm15 = vcmp.eq.s32.totalorder %v234_v45, 0 }
  0x89   : > { %v249_v11 = vsel %vm240_vm14, -2.0357144, %v1516_v41 }
  0xef   : > { %v549_v47 = vpop.f32.mrf.mxu0  ;;  %v675_v48 = vpop.f32.mrf.mxu1 }
  0xf0   : > { %v921_v51 = vmul.f32 %v549_v47, %v1794_v44  ;;  %v984_v52 = vmul.f32 %v675_v48, %v1794_v44 }
  0xf1   : > { %v551_v54 = vpop.f32.mrf.mxu0  ;;  %v677_v55 = vpop.f32.mrf.mxu1 }
  0xf2   : > { %v1005_v56 = vadd.f32 %v921_v51, %v1797_v46  ;;  %v1068_v57 = vadd.f32 %v984_v52, %v1797_v46  ;;  %v922_v58 = vmul.f32 %v551_v54, %v1799_v49  ;;  %v985_v59 = vmul.f32 %v677_v55, %v1799_v49 }
  0xf3   : > { %v555_v60 = vpop.f32.mrf.mxu0  ;;  %v681_v61 = vpop.f32.mrf.mxu1 }
  0xf4   : > { %1089 = vst [vmem:[%s1807_s9] sm:$0xff] %v1005_v56  ;;  %1152 = vst [vmem:[%s1807_s9 + $0x1f8] sm:$0xff] %v1068_v57  ;;  %v1006_v63 = vadd.f32 %v922_v58, %v1809_v53  ;;  %v1069_v1 = vadd.f32 %v985_v59, %v1809_v53  ;;  %v924_v2 = vmul.f32 %v555_v60, %v1794_v44 }
  0xf5   : > { %v987_v3 = vmul.f32 %v681_v61, %v1794_v44  ;;  %v557_v4 = vpop.f32.mrf.mxu0  ;;  %v683_v5 = vpop.f32.mrf.mxu1 }
  0xf6   : > { %1090 = vst [vmem:[%s1807_s9 + $0x8] sm:$0xff] %v1006_v63  ;;  %1153 = vst [vmem:[%s1807_s9 + $0x200] sm:$0xff] %v1069_v1  ;;  %v1008_v6 = vadd.f32 %v924_v2, %v1797_v46  ;;  %v925_v8 = vmul.f32 %v557_v4, %v1799_v49  ;;  %v988_v9 = vmul.f32 %v683_v5, %v1799_v49  ;;  %v243_v4 = vsel %vm240_vm14, 0.017507004, %v1515_v39 }
  0xf7   : > { %v1071_v7 = vadd.f32 %v987_v3, %v1797_v46  ;;  %v561_v10 = vpop.f32.mrf.mxu0 }
  0xf8   : > { %1092 = vst [vmem:[%s1807_s9 + $0x18] sm:$0xff] %v1008_v6  ;;  %v1009_v12 = vadd.f32 %v925_v8, %v1809_v53  ;;  %v1072_v13 = vadd.f32 %v988_v9, %v1809_v53  ;;  %v927_v14 = vmul.f32 %v561_v10, %v1794_v44  ;;  %v687_v15 = vpop.f32.mrf.mxu1 }
  0xf9   : > { %1155 = vst [vmem:[%s1807_s9 + $0x210] sm:$0xff] %v1071_v7  ;;  %v990_v16 = vmul.f32 %v687_v15, %v1794_v44  ;;  %v563_v17 = vpop.f32.mrf.mxu0 }
  0xfa   : > { %1093 = vst [vmem:[%s1807_s9 + $0x20] sm:$0xff] %v1009_v12  ;;  %1156 = vst [vmem:[%s1807_s9 + $0x218] sm:$0xff] %v1072_v13  ;;  %v1011_v18 = vadd.f32 %v927_v14, %v1797_v46  ;;  %v928_v19 = vmul.f32 %v563_v17, %v1799_v49  ;;  %v689_v20 = vpop.f32.mrf.mxu1  ;;  %v1890_v14 = vsel %vm237_vm15, 0.017124753, %v243_v4 }
  0xfb   : > { %v1074_v21 = vadd.f32 %v990_v16, %v1797_v46  ;;  %v991_v22 = vmul.f32 %v689_v20, %v1799_v49  ;;  %v567_v23 = vpop.f32.mrf.mxu0 }
  0xfc   : > { %1095 = vst [vmem:[%s1807_s9 + $0x30] sm:$0xff] %v1011_v18  ;;  %v1012_v24 = vadd.f32 %v928_v19, %v1809_v53  ;;  %v930_v25 = vmul.f32 %v567_v23, %v1794_v44  ;;  %v693_v26 = vpop.f32.mrf.mxu1  ;;  %v1899_v19 = vsel %vm237_vm15, -2.117904, %v249_v11 }
  0xfd   : > { %1158 = vst [vmem:[%s1807_s9 + $0x228] sm:$0xff] %v1074_v21  ;;  %v1075_v27 = vadd.f32 %v991_v22, %v1809_v53  ;;  %v993_v0 = vmul.f32 %v693_v26, %v1794_v44  ;;  %v569_v28 = vpop.f32.mrf.mxu0 }
  0xfe   : > { %1096 = vst [vmem:[%s1807_s9 + $0x38] sm:$0xff] %v1012_v24  ;;  %v1014_v30 = vadd.f32 %v930_v25, %v1797_v46  ;;  %v931_v31 = vmul.f32 %v569_v28, %v1799_v49  ;;  %v695_v32 = vpop.f32.mrf.mxu1 }
  0xff   : > { %1159 = vst [vmem:[%s1807_s9 + $0x230] sm:$0xff] %v1075_v27  ;;  %v1077_v33 = vadd.f32 %v993_v0, %v1797_v46  ;;  %v994_v34 = vmul.f32 %v695_v32, %v1799_v49  ;;  %v573_v35 = vpop.f32.mrf.mxu0 }
 0x100   : > { %1098 = vst [vmem:[%s1807_s9 + $0x48] sm:$0xff] %v1014_v30  ;;  %v1015_v36 = vadd.f32 %v931_v31, %v1809_v53  ;;  %v933_v37 = vmul.f32 %v573_v35, %v1794_v44  ;;  %v699_v38 = vpop.f32.mrf.mxu1 }
 0x101   : > { %1161 = vst [vmem:[%s1807_s9 + $0x240] sm:$0xff] %v1077_v33  ;;  %v1078_v40 = vadd.f32 %v994_v34, %v1809_v53  ;;  %v996_v42 = vmul.f32 %v699_v38, %v1794_v44  ;;  %v575_v43 = vpop.f32.mrf.mxu0 }
 0x102   : > { %1099 = vst [vmem:[%s1807_s9 + $0x50] sm:$0xff] %v1015_v36  ;;  %v1017_v47 = vadd.f32 %v933_v37, %v1797_v46  ;;  %v934_v48 = vmul.f32 %v575_v43, %v1799_v49  ;;  %v701_v50 = vpop.f32.mrf.mxu1 }
 0x103   : > { %1162 = vst [vmem:[%s1807_s9 + $0x248] sm:$0xff] %v1078_v40  ;;  %v1080_v51 = vadd.f32 %v996_v42, %v1797_v46  ;;  %v997_v52 = vmul.f32 %v701_v50, %v1799_v49  ;;  %v579_v54 = vpop.f32.mrf.mxu0 }
 0x104   : > { %1101 = vst [vmem:[%s1807_s9 + $0x60] sm:$0xff] %v1017_v47  ;;  %v1018_v55 = vadd.f32 %v934_v48, %v1809_v53  ;;  %v936_v56 = vmul.f32 %v579_v54, %v1794_v44  ;;  %v705_v57 = vpop.f32.mrf.mxu1 }
 0x105   : > { %1164 = vst [vmem:[%s1807_s9 + $0x258] sm:$0xff] %v1080_v51  ;;  %v1081_v58 = vadd.f32 %v997_v52, %v1809_v53  ;;  %v999_v59 = vmul.f32 %v705_v57, %v1794_v44  ;;  %v581_v60 = vpop.f32.mrf.mxu0 }
 0x106   : > { %1102 = vst [vmem:[%s1807_s9 + $0x68] sm:$0xff] %v1018_v55  ;;  %v1020_v61 = vadd.f32 %v936_v56, %v1797_v46  ;;  %v937_v62 = vmul.f32 %v581_v60, %v1799_v49  ;;  %v707_v63 = vpop.f32.mrf.mxu1 }
 0x107   : > { %1165 = vst [vmem:[%s1807_s9 + $0x260] sm:$0xff] %v1081_v58  ;;  %v1083_v1 = vadd.f32 %v999_v59, %v1797_v46  ;;  %v1000_v2 = vmul.f32 %v707_v63, %v1799_v49  ;;  %v585_v3 = vpop.f32.mrf.mxu0 }
 0x108   : > { %1104 = vst [vmem:[%s1807_s9 + $0x78] sm:$0xff] %v1020_v61  ;;  %v1021_v5 = vadd.f32 %v937_v62, %v1809_v53  ;;  %v939_v6 = vmul.f32 %v585_v3, %v1794_v44  ;;  %v711_v7 = vpop.f32.mrf.mxu1 }
 0x109   : > { %1167 = vst [vmem:[%s1807_s9 + $0x270] sm:$0xff] %v1083_v1  ;;  %v1084_v8 = vadd.f32 %v1000_v2, %v1809_v53  ;;  %v1002_v9 = vmul.f32 %v711_v7, %v1794_v44  ;;  %v587_v10 = vpop.f32.mrf.mxu0 }
 0x10a   : > { %1105 = vst [vmem:[%s1807_s9 + $0x80] sm:$0xff] %v1021_v5  ;;  %v1023_v39 = vadd.f32 %v939_v6, %v1797_v46  ;;  %v940_v12 = vmul.f32 %v587_v10, %v1799_v49  ;;  %v713_v13 = vpop.f32.mrf.mxu1 }
 0x10b   : > { %1168 = vst [vmem:[%s1807_s9 + $0x278] sm:$0xff] %v1084_v8  ;;  %v1086_v15 = vadd.f32 %v1002_v9, %v1797_v46  ;;  %v1003_v16 = vmul.f32 %v713_v13, %v1799_v49  ;;  %v591_v17 = vpop.f32.mrf.mxu0 }
 0x10c   : > { %1107 = vst [vmem:[%s1807_s9 + $0x90] sm:$0xff] %v1023_v39  ;;  %v1024_v41 = vadd.f32 %v940_v12, %v1809_v53  ;;  %v942_v18 = vmul.f32 %v591_v17, %v1794_v44  ;;  %v1391_v20 = vpop.f32.mrf.mxu1 }
 0x10d   : > { %1170 = vst [vmem:[%s1807_s9 + $0x288] sm:$0xff] %v1086_v15  ;;  %v1087_v21 = vadd.f32 %v1003_v16, %v1809_v53  ;;  %v926_v22 = vmul.f32 %v1391_v20, %v1890_v14  ;;  %v593_v23 = vpop.f32.mrf.mxu0 }
 0x10e   : > { %1108 = vst [vmem:[%s1807_s9 + $0x98] sm:$0xff] %v1024_v41  ;;  %v1026_v24 = vadd.f32 %v942_v18, %v1797_v46  ;;  %v943_v25 = vmul.f32 %v593_v23, %v1799_v49  ;;  %v782_v26 = vpop.f32.mrf.mxu1 }
 0x10f   : > { %1171 = vst [vmem:[%s1807_s9 + $0x290] sm:$0xff] %v1087_v21  ;;  %v1010_v27 = vadd.f32 %v926_v22, %v1899_v19  ;;  %v923_v0 = vmul.f32 %v782_v26, %v1890_v14  ;;  %v597_v28 = vpop.f32.mrf.mxu0 }
 0x110   : > { %1110 = vst [vmem:[%s1807_s9 + $0xa8] sm:$0xff] %v1026_v24  ;;  %v1027_v29 = vadd.f32 %v943_v25, %v1809_v53  ;;  %v945_v30 = vmul.f32 %v597_v28, %v1794_v44  ;;  %v1394_v31 = vpop.f32.mrf.mxu1 }
 0x111   : > { %1094 = vst [vmem:[%s1807_s9 + $0x28] sm:$0xff] %v1010_v27  ;;  %v1007_v32 = vadd.f32 %v923_v0, %v1899_v19  ;;  %v932_v33 = vmul.f32 %v1394_v31, %v1890_v14  ;;  %v599_v34 = vpop.f32.mrf.mxu0 }
 0x112   : > { %1111 = vst [vmem:[%s1807_s9 + $0xb0] sm:$0xff] %v1027_v29  ;;  %v1029_v35 = vadd.f32 %v945_v30, %v1797_v46  ;;  %v946_v36 = vmul.f32 %v599_v34, %v1799_v49  ;;  %v792_v37 = vpop.f32.mrf.mxu1 }
 0x113   : > { %1091 = vst [vmem:[%s1807_s9 + $0x10] sm:$0xff] %v1007_v32  ;;  %v1016_v38 = vadd.f32 %v932_v33, %v1899_v19  ;;  %v929_v40 = vmul.f32 %v792_v37, %v1890_v14  ;;  %v603_v42 = vpop.f32.mrf.mxu0 }
 0x114   : > { %1113 = vst [vmem:[%s1807_s9 + $0xc0] sm:$0xff] %v1029_v35  ;;  %v1030_v43 = vadd.f32 %v946_v36, %v1809_v53  ;;  %v948_v45 = vmul.f32 %v603_v42, %v1794_v44  ;;  %v1397_v47 = vpop.f32.mrf.mxu1 }
 0x115   : > { %1100 = vst [vmem:[%s1807_s9 + $0x58] sm:$0xff] %v1016_v38  ;;  %v1013_v48 = vadd.f32 %v929_v40, %v1899_v19  ;;  %v938_v50 = vmul.f32 %v1397_v47, %v1890_v14  ;;  %v605_v51 = vpop.f32.mrf.mxu0 }
 0x116   : > { %1114 = vst [vmem:[%s1807_s9 + $0xc8] sm:$0xff] %v1030_v43  ;;  %v1032_v52 = vadd.f32 %v948_v45, %v1797_v46  ;;  %v949_v54 = vmul.f32 %v605_v51, %v1799_v49  ;;  %v802_v55 = vpop.f32.mrf.mxu1 }
 0x117   : > { %1097 = vst [vmem:[%s1807_s9 + $0x40] sm:$0xff] %v1013_v48  ;;  %v1022_v56 = vadd.f32 %v938_v50, %v1899_v19  ;;  %v935_v57 = vmul.f32 %v802_v55, %v1890_v14  ;;  %v609_v58 = vpop.f32.mrf.mxu0 }
 0x118   : > { %1116 = vst [vmem:[%s1807_s9 + $0xd8] sm:$0xff] %v1032_v52  ;;  %v1033_v59 = vadd.f32 %v949_v54, %v1809_v53  ;;  %v951_v60 = vmul.f32 %v609_v58, %v1794_v44  ;;  %v1400_v61 = vpop.f32.mrf.mxu1 }
 0x119   : > { %1106 = vst [vmem:[%s1807_s9 + $0x88] sm:$0xff] %v1022_v56  ;;  %v1019_v62 = vadd.f32 %v935_v57, %v1899_v19  ;;  %v944_v63 = vmul.f32 %v1400_v61, %v1890_v14  ;;  %v611_v1 = vpop.f32.mrf.mxu0 }
 0x11a   : > { %1117 = vst [vmem:[%s1807_s9 + $0xe0] sm:$0xff] %v1033_v59  ;;  %v1035_v2 = vadd.f32 %v951_v60, %v1797_v46  ;;  %v952_v3 = vmul.f32 %v611_v1, %v1799_v49  ;;  %v812_v4 = vpop.f32.mrf.mxu1 }
 0x11b   : > { %1103 = vst [vmem:[%s1807_s9 + $0x70] sm:$0xff] %v1019_v62  ;;  %v1028_v5 = vadd.f32 %v944_v63, %v1899_v19  ;;  %v941_v6 = vmul.f32 %v812_v4, %v1890_v14  ;;  %v615_v7 = vpop.f32.mrf.mxu0 }
 0x11c   : > { %1119 = vst [vmem:[%s1807_s9 + $0xf0] sm:$0xff] %v1035_v2  ;;  %v1036_v8 = vadd.f32 %v952_v3, %v1809_v53  ;;  %v954_v9 = vmul.f32 %v615_v7, %v1794_v44  ;;  %v1403_v10 = vpop.f32.mrf.mxu1 }
 0x11d   : > { %1112 = vst [vmem:[%s1807_s9 + $0xb8] sm:$0xff] %v1028_v5  ;;  %v1025_v11 = vadd.f32 %v941_v6, %v1899_v19  ;;  %v950_v39 = vmul.f32 %v1403_v10, %v1890_v14  ;;  %v617_v12 = vpop.f32.mrf.mxu0 }
 0x11e   : > { %1120 = vst [vmem:[%s1807_s9 + $0xf8] sm:$0xff] %v1036_v8  ;;  %v1038_v13 = vadd.f32 %v954_v9, %v1797_v46  ;;  %v955_v15 = vmul.f32 %v617_v12, %v1799_v49  ;;  %v822_v16 = vpop.f32.mrf.mxu1 }
 0x11f   : > { %1109 = vst [vmem:[%s1807_s9 + $0xa0] sm:$0xff] %v1025_v11  ;;  %v1034_v17 = vadd.f32 %v950_v39, %v1899_v19  ;;  %v947_v41 = vmul.f32 %v822_v16, %v1890_v14  ;;  %v621_v18 = vpop.f32.mrf.mxu0 }
 0x120   : > { %1122 = vst [vmem:[%s1807_s9 + $0x108] sm:$0xff] %v1038_v13  ;;  %v1039_v20 = vadd.f32 %v955_v15, %v1809_v53  ;;  %v957_v21 = vmul.f32 %v621_v18, %v1794_v44  ;;  %v1406_v22 = vpop.f32.mrf.mxu1 }
 0x121   : > { %1118 = vst [vmem:[%s1807_s9 + $0xe8] sm:$0xff] %v1034_v17  ;;  %v1031_v23 = vadd.f32 %v947_v41, %v1899_v19  ;;  %v956_v24 = vmul.f32 %v1406_v22, %v1890_v14  ;;  %v623_v25 = vpop.f32.mrf.mxu0 }
 0x122   : > { %1123 = vst [vmem:[%s1807_s9 + $0x110] sm:$0xff] %v1039_v20  ;;  %v1041_v26 = vadd.f32 %v957_v21, %v1797_v46  ;;  %v958_v27 = vmul.f32 %v623_v25, %v1799_v49  ;;  %v832_v0 = vpop.f32.mrf.mxu1 }
 0x123   : > { %1115 = vst [vmem:[%s1807_s9 + $0xd0] sm:$0xff] %v1031_v23  ;;  %v1040_v28 = vadd.f32 %v956_v24, %v1899_v19  ;;  %v953_v29 = vmul.f32 %v832_v0, %v1890_v14  ;;  %v627_v30 = vpop.f32.mrf.mxu0 }
 0x124   : > { %1125 = vst [vmem:[%s1807_s9 + $0x120] sm:$0xff] %v1041_v26  ;;  %v1042_v31 = vadd.f32 %v958_v27, %v1809_v53  ;;  %v960_v32 = vmul.f32 %v627_v30, %v1794_v44  ;;  %v1409_v33 = vpop.f32.mrf.mxu1 }
 0x125   : > { %1124 = vst [vmem:[%s1807_s9 + $0x118] sm:$0xff] %v1040_v28  ;;  %v1037_v34 = vadd.f32 %v953_v29, %v1899_v19  ;;  %v962_v35 = vmul.f32 %v1409_v33, %v1890_v14  ;;  %v629_v36 = vpop.f32.mrf.mxu0 }
 0x126   : > { %1126 = vst [vmem:[%s1807_s9 + $0x128] sm:$0xff] %v1042_v31  ;;  %v1044_v37 = vadd.f32 %v960_v32, %v1797_v46  ;;  %v961_v38 = vmul.f32 %v629_v36, %v1799_v49  ;;  %v842_v40 = vpop.f32.mrf.mxu1 }
 0x127   : > { %1121 = vst [vmem:[%s1807_s9 + $0x100] sm:$0xff] %v1037_v34  ;;  %v1046_v42 = vadd.f32 %v962_v35, %v1899_v19  ;;  %v959_v43 = vmul.f32 %v842_v40, %v1890_v14  ;;  %v633_v45 = vpop.f32.mrf.mxu0 }
 0x128   : > { %1128 = vst [vmem:[%s1807_s9 + $0x138] sm:$0xff] %v1044_v37  ;;  %v1045_v47 = vadd.f32 %v961_v38, %v1809_v53  ;;  %v963_v48 = vmul.f32 %v633_v45, %v1794_v44  ;;  %v1412_v50 = vpop.f32.mrf.mxu1 }
 0x129   : > { %1130 = vst [vmem:[%s1807_s9 + $0x148] sm:$0xff] %v1046_v42  ;;  %v1043_v51 = vadd.f32 %v959_v43, %v1899_v19  ;;  %v968_v52 = vmul.f32 %v1412_v50, %v1890_v14  ;;  %v635_v54 = vpop.f32.mrf.mxu0 }
 0x12a   : > { %1129 = vst [vmem:[%s1807_s9 + $0x140] sm:$0xff] %v1045_v47  ;;  %v1047_v55 = vadd.f32 %v963_v48, %v1797_v46  ;;  %v964_v56 = vmul.f32 %v635_v54, %v1799_v49  ;;  %v852_v57 = vpop.f32.mrf.mxu1 }
 0x12b   : > { %1127 = vst [vmem:[%s1807_s9 + $0x130] sm:$0xff] %v1043_v51  ;;  %v1052_v58 = vadd.f32 %v968_v52, %v1899_v19  ;;  %v965_v59 = vmul.f32 %v852_v57, %v1890_v14  ;;  %v639_v60 = vpop.f32.mrf.mxu0 }
 0x12c   : > { %1131 = vst [vmem:[%s1807_s9 + $0x150] sm:$0xff] %v1047_v55  ;;  %v1048_v61 = vadd.f32 %v964_v56, %v1809_v53  ;;  %v966_v62 = vmul.f32 %v639_v60, %v1794_v44  ;;  %v1415_v63 = vpop.f32.mrf.mxu1 }
 0x12d   : > { %1136 = vst [vmem:[%s1807_s9 + $0x178] sm:$0xff] %v1052_v58  ;;  %v1049_v1 = vadd.f32 %v965_v59, %v1899_v19  ;;  %v974_v2 = vmul.f32 %v1415_v63, %v1890_v14  ;;  %v641_v3 = vpop.f32.mrf.mxu0 }
 0x12e   : > { %1132 = vst [vmem:[%s1807_s9 + $0x158] sm:$0xff] %v1048_v61  ;;  %v1050_v4 = vadd.f32 %v966_v62, %v1797_v46  ;;  %v967_v5 = vmul.f32 %v641_v3, %v1799_v49  ;;  %v862_v6 = vpop.f32.mrf.mxu1 }
 0x12f   : > { %1133 = vst [vmem:[%s1807_s9 + $0x160] sm:$0xff] %v1049_v1  ;;  %v1058_v7 = vadd.f32 %v974_v2, %v1899_v19  ;;  %v971_v8 = vmul.f32 %v862_v6, %v1890_v14  ;;  %v645_v9 = vpop.f32.mrf.mxu0 }
 0x130   : > { %1134 = vst [vmem:[%s1807_s9 + $0x168] sm:$0xff] %v1050_v4  ;;  %v1051_v10 = vadd.f32 %v967_v5, %v1809_v53  ;;  %v969_v11 = vmul.f32 %v645_v9, %v1794_v44  ;;  %v1418_v39 = vpop.f32.mrf.mxu1 }
 0x131   : > { %1142 = vst [vmem:[%s1807_s9 + $0x1a8] sm:$0xff] %v1058_v7  ;;  %v1055_v12 = vadd.f32 %v971_v8, %v1899_v19  ;;  %v980_v13 = vmul.f32 %v1418_v39, %v1890_v14  ;;  %v647_v15 = vpop.f32.mrf.mxu0 }
 0x132   : > { %1135 = vst [vmem:[%s1807_s9 + $0x170] sm:$0xff] %v1051_v10  ;;  %v1053_v16 = vadd.f32 %v969_v11, %v1797_v46  ;;  %v970_v17 = vmul.f32 %v647_v15, %v1799_v49  ;;  %v872_v41 = vpop.f32.mrf.mxu1 }
 0x133   : > { %1139 = vst [vmem:[%s1807_s9 + $0x190] sm:$0xff] %v1055_v12  ;;  %v1064_v18 = vadd.f32 %v980_v13, %v1899_v19  ;;  %v977_v20 = vmul.f32 %v872_v41, %v1890_v14  ;;  %v651_v21 = vpop.f32.mrf.mxu0 }
 0x134   : > { %1137 = vst [vmem:[%s1807_s9 + $0x180] sm:$0xff] %v1053_v16  ;;  %v1054_v22 = vadd.f32 %v970_v17, %v1809_v53  ;;  %v972_v23 = vmul.f32 %v651_v21, %v1794_v44  ;;  %v1421_v24 = vpop.f32.mrf.mxu1 }
 0x135   : > { %1148 = vst [vmem:[%s1807_s9 + $0x1d8] sm:$0xff] %v1064_v18  ;;  %v1061_v25 = vadd.f32 %v977_v20, %v1899_v19  ;;  %v986_v26 = vmul.f32 %v1421_v24, %v1890_v14  ;;  %v653_v27 = vpop.f32.mrf.mxu0 }
 0x136   : > { %1138 = vst [vmem:[%s1807_s9 + $0x188] sm:$0xff] %v1054_v22  ;;  %v1056_v0 = vadd.f32 %v972_v23, %v1797_v46  ;;  %v973_v28 = vmul.f32 %v653_v27, %v1799_v49  ;;  %v882_v29 = vpop.f32.mrf.mxu1 }
 0x137   : > { %1145 = vst [vmem:[%s1807_s9 + $0x1c0] sm:$0xff] %v1061_v25  ;;  %v1070_v30 = vadd.f32 %v986_v26, %v1899_v19  ;;  %v983_v31 = vmul.f32 %v882_v29, %v1890_v14  ;;  %v657_v32 = vpop.f32.mrf.mxu0 }
 0x138   : > { %1140 = vst [vmem:[%s1807_s9 + $0x198] sm:$0xff] %v1056_v0  ;;  %v1057_v33 = vadd.f32 %v973_v28, %v1809_v53  ;;  %v975_v34 = vmul.f32 %v657_v32, %v1794_v44  ;;  %v1424_v35 = vpop.f32.mrf.mxu1 }
 0x139   : > { %1154 = vst [vmem:[%s1807_s9 + $0x208] sm:$0xff] %v1070_v30  ;;  %v1067_v36 = vadd.f32 %v983_v31, %v1899_v19  ;;  %v992_v37 = vmul.f32 %v1424_v35, %v1890_v14  ;;  %v659_v38 = vpop.f32.mrf.mxu0 }
 0x13a   : > { %1141 = vst [vmem:[%s1807_s9 + $0x1a0] sm:$0xff] %v1057_v33  ;;  %v1059_v40 = vadd.f32 %v975_v34, %v1797_v46  ;;  %v976_v42 = vmul.f32 %v659_v38, %v1799_v49  ;;  %v892_v43 = vpop.f32.mrf.mxu1 }
 0x13b   : > { %1151 = vst [vmem:[%s1807_s9 + $0x1f0] sm:$0xff] %v1067_v36  ;;  %v1076_v45 = vadd.f32 %v992_v37, %v1899_v19  ;;  %v989_v47 = vmul.f32 %v892_v43, %v1890_v14  ;;  %v663_v48 = vpop.f32.mrf.mxu0 }
 0x13c   : > { %1143 = vst [vmem:[%s1807_s9 + $0x1b0] sm:$0xff] %v1059_v40  ;;  %v1060_v50 = vadd.f32 %v976_v42, %v1809_v53  ;;  %v978_v51 = vmul.f32 %v663_v48, %v1794_v44  ;;  %v1427_v52 = vpop.f32.mrf.mxu1 }
 0x13d   : > { %1160 = vst [vmem:[%s1807_s9 + $0x238] sm:$0xff] %v1076_v45  ;;  %v1073_v54 = vadd.f32 %v989_v47, %v1899_v19  ;;  %v998_v55 = vmul.f32 %v1427_v52, %v1890_v14  ;;  %v665_v56 = vpop.f32.mrf.mxu0 }
 0x13e   : > { %1144 = vst [vmem:[%s1807_s9 + $0x1b8] sm:$0xff] %v1060_v50  ;;  %v1062_v57 = vadd.f32 %v978_v51, %v1797_v46  ;;  %v979_v58 = vmul.f32 %v665_v56, %v1799_v49  ;;  %v902_v59 = vpop.f32.mrf.mxu1 }
 0x13f   : > { %1157 = vst [vmem:[%s1807_s9 + $0x220] sm:$0xff] %v1073_v54  ;;  %v1082_v60 = vadd.f32 %v998_v55, %v1899_v19  ;;  %v995_v61 = vmul.f32 %v902_v59, %v1890_v14  ;;  %v669_v62 = vpop.f32.mrf.mxu0 }
 0x140   : > { %1146 = vst [vmem:[%s1807_s9 + $0x1c8] sm:$0xff] %v1062_v57  ;;  %v1063_v63 = vadd.f32 %v979_v58, %v1809_v53  ;;  %v981_v1 = vmul.f32 %v669_v62, %v1794_v44  ;;  %v1430_v2 = vpop.f32.mrf.mxu1 }
 0x141   : > { %1166 = vst [vmem:[%s1807_s9 + $0x268] sm:$0xff] %v1082_v60  ;;  %v1079_v3 = vadd.f32 %v995_v61, %v1899_v19  ;;  %v1004_v4 = vmul.f32 %v1430_v2, %v1890_v14  ;;  %v671_v5 = vpop.f32.mrf.mxu0 }
 0x142   : > { %1147 = vst [vmem:[%s1807_s9 + $0x1d0] sm:$0xff] %v1063_v63  ;;  %v1065_v6 = vadd.f32 %v981_v1, %v1797_v46  ;;  %v982_v7 = vmul.f32 %v671_v5, %v1799_v49  ;;  %v912_v8 = vpop.f32.mrf.mxu1 }
 0x143   : > { %1163 = vst [vmem:[%s1807_s9 + $0x250] sm:$0xff] %v1079_v3  ;;  %v1088_v9 = vadd.f32 %v1004_v4, %v1899_v19  ;;  %v1001_v44 = vmul.f32 %v912_v8, %v1890_v14 }
 0x144   : > { %1149 = vst [vmem:[%s1807_s9 + $0x1e0] sm:$0xff] %v1065_v6  ;;  %v1066_v10 = vadd.f32 %v982_v7, %v1809_v53 }
 0x145   : > { %1172 = vst [vmem:[%s1807_s9 + $0x298] sm:$0xff] %v1088_v9  ;;  %v1085_v11 = vadd.f32 %v1001_v44, %v1899_v19 }
 0x146   : > { %1150 = vst [vmem:[%s1807_s9 + $0x1e8] sm:$0xff] %v1066_v10 }
 0x147   : > { %1169 = vst [vmem:[%s1807_s9 + $0x280] sm:$0xff] %v1085_v11 }
 0x148 PF: > { %s12_s11 = sadd.s32 1, %s1512_s11   ;;  %s2084_s9 = smov %s1508_s10 }
 0x149   : > { %p9_p5 = scmp.ge.s32.totalorder %s12_s11, 4   ;;  %s2085_s10 = smov %s2087_s12 }
 0x14b   :  { %11 = sbr.rel (!%p9_p5) target bundleno = 2 (0x2), region = 58 }

</bundles_post_ra>
